<compile_context>
chip_gen: v7x
topology: tpu7x:2x2x1
jax: 0.10.0
libtpu: 0.0.40
codegen_flags: <defaults>
</compile_context>

<pallas_src>
import functools
import math

import jax
import jax.numpy as jnp
from jax.experimental import pallas as pl
from jax.experimental.pallas import tpu as pltpu


_LANE = 128        # lane width: channel padding granularity
_SUBLANE = 16      # row granularity safe for bf16 sublane packing


def _round_up(x, m):
    return ((x + m - 1) // m) * m


def _vmem_capacity_bytes():
    """Per-TensorCore VMEM capacity; conservative 64 MiB fallback (v7x)."""
    try:
        info = pltpu.get_tpu_info()
        cap = getattr(info, "vmem_capacity_bytes", None)
        if cap:
            return int(cap)
    except Exception:
        pass
    return 64 * 1024 * 1024


def _mlp_kernel(x_ref, w0_ref, b0_ref, wl_ref, bl_ref, out_ref, *,
                num_hidden, unroll):
    """Push one (TM, C_in_p) row tile through the whole MLP, fused in VMEM.

    x_ref  : (TM, C_in_p)                     streamed (original x dtype)
    w0_ref : (C_in_p, C_out_p)                compute dtype  (VMEM-resident)
    b0_ref : (1, C_out_p)                     f32            (VMEM-resident)
    wl_ref : (max(L-1,1), C_out_p, C_out_p)   compute dtype  (VMEM-resident)
    bl_ref : (max(L-1,1), 1, C_out_p)         f32            (VMEM-resident)
    out_ref: (TM, C_out_p)                    out dtype (lane-dense)
    """
    # In-kernel cast (no separate wrapper HBM cast pass); no-op if dtypes match.
    x = x_ref[...].astype(w0_ref.dtype)
    h = jnp.dot(x, w0_ref[...], preferred_element_type=jnp.float32)
    h = h + b0_ref[...]                        # (1, C_out_p) broadcasts over rows

    if num_hidden == 0:
        pass
    elif num_hidden <= 4:
        # Shallow: static unroll, one MXU matmul per layer.
        for layer in range(num_hidden):
            a = jnp.maximum(h, 0.0).astype(wl_ref.dtype)   # Identity norm + ReLU
            h = jnp.dot(a, wl_ref[layer],
                        preferred_element_type=jnp.float32) + bl_ref[layer]
    else:
        # Deep: visible loop bounds live ranges / code size; partial unroll gives
        # the scheduler adjacent-layer VPU work to overlap with MXU push/drain.
        def body(layer, h):
            a = jnp.maximum(h, 0.0).astype(wl_ref.dtype)
            return jnp.dot(a, wl_ref[layer],
                           preferred_element_type=jnp.float32) + bl_ref[layer]
        h = jax.lax.fori_loop(0, num_hidden, body, h, unroll=unroll)

    out_ref[...] = h.astype(out_ref.dtype)


def mlp_forward(x, initial_weight, initial_bias, final_weight, final_bias, *,
                compute_dtype=jnp.bfloat16, out_dtype=None):
    """x: (..., C_in). Returns (..., C_out).

    compute_dtype: dtype fed to the MXU (bf16 recommended; f32 for bit-accuracy).
    out_dtype:     output dtype (None -> x.dtype). bf16 halves writeback traffic.
    Accumulation is always f32.

    NOTE: the bf16 path downcasts the activation every layer; error compounds
    with num_layers even though accumulation is f32.
    """
    c_in, c_out = initial_weight.shape
    num_hidden = final_weight.shape[0]          # == num_layers - 1 (may be 0)
    nh_buf = max(num_hidden, 1)
    lead = x.shape[:-1]
    m = math.prod(lead) if lead else 1

    out_dtype = jnp.dtype(out_dtype) if out_dtype is not None else jnp.dtype(x.dtype)
    x_item = jnp.dtype(x.dtype).itemsize
    w_item = jnp.dtype(compute_dtype).itemsize
    o_item = out_dtype.itemsize

    # Lane-dense input and output / hidden widths (zero padding is exact).
    c_in_p = _round_up(c_in, _LANE)
    c_out_p = _round_up(c_out, _LANE)

    # --- per-generation VMEM budget ---
    vmem_cap = _vmem_capacity_bytes()
    vmem_budget = int(vmem_cap * 0.72)          # ~46 MiB v7x, ~92 MiB v5e/v6e
    vmem_limit = int(vmem_cap * 0.85)           # ~54 MiB v7x, ~109 MiB v5e/v6e

    # Resident weights are single-buffered (pl.Buffered(1)).
    weight_bytes = ((c_in_p * c_out_p + nh_buf * c_out_p * c_out_p) * w_item
                    + (1 + nh_buf) * c_out_p * 4)
    per_row_bytes = (2 * c_in_p * x_item        # double-buffered x tile (streamed dtype)
                     + c_in_p * w_item          # in-kernel compute-dtype copy of x tile
                     + 2 * c_out_p * o_item     # double-buffered out tile
                     + 4 * c_out_p * 4)         # f32 intermediates (h, relu copy, ...)
    avail = max(vmem_budget - weight_bytes, 1 << 20)
    tm_cap = int(avail // per_row_bytes)
    if tm_cap >= 256:
        tm_cap = (tm_cap // 256) * 256          # 256-aligned M tiles (v6e/v7x MXU width)
    elif tm_cap >= _LANE:
        tm_cap = (tm_cap // _LANE) * _LANE
    else:
        tm_cap = _round_up(max(tm_cap, 1), _SUBLANE)
    tm_cap = max(_SUBLANE, min(2048, tm_cap))

    m_pad = _round_up(max(m, 1), _SUBLANE)
    if m_pad <= tm_cap:
        if m_pad >= 2 * _SUBLANE:
            # >=2 grid steps so both v7x TensorCores get work (no effect v5e/v6e).
            tm = _round_up((m_pad + 1) // 2, _SUBLANE)
            m_pad = _round_up(m_pad, tm)
        else:
            tm = m_pad
    else:
        tm = tm_cap
        m_pad = _round_up(m, tm)
    grid = (m_pad // tm,)

    # --- pad operands (zero padding is exact: padded channels stay 0 through
    #     bias-add, ReLU and subsequent matmuls).  x is NOT cast here. ---
    x2d = x.reshape(m, c_in)
    if m_pad != m or c_in_p != c_in:
        x2d = jnp.pad(x2d, ((0, m_pad - m), (0, c_in_p - c_in)))

    pad_c = c_out_p - c_out
    w0 = jnp.pad(initial_weight,
                 ((0, c_in_p - c_in), (0, pad_c))).astype(compute_dtype)
    b0 = jnp.pad(initial_bias, (0, pad_c)).reshape(1, c_out_p).astype(jnp.float32)
    if num_hidden > 0:
        wl = jnp.pad(final_weight,
                     ((0, 0), (0, pad_c), (0, pad_c))).astype(compute_dtype)
        bl = jnp.pad(final_bias, ((0, 0), (0, pad_c)))
        bl = bl.reshape(num_hidden, 1, c_out_p).astype(jnp.float32)
    else:
        # num_layers == 1: dummy (unused) hidden weights so pallas_call never
        # sees a zero-sized operand.
        wl = jnp.zeros((1, c_out_p, c_out_p), compute_dtype)
        bl = jnp.zeros((1, 1, c_out_p), jnp.float32)

    unroll = 4 if c_out_p <= 256 else 2

    flops = 2 * m_pad * (c_in_p * c_out_p + num_hidden * c_out_p * c_out_p)
    bytes_accessed = (m_pad * c_in_p * x_item + weight_bytes
                      + m_pad * c_out_p * o_item)
    cost = pl.CostEstimate(flops=flops, transcendentals=0,
                           bytes_accessed=bytes_accessed)

    def build_in_specs(weight_pipeline_mode):
        kw = ({} if weight_pipeline_mode is None
              else {"pipeline_mode": weight_pipeline_mode})
        return [
            pl.BlockSpec((tm, c_in_p), lambda i: (i, 0)),                 # streamed rows
            pl.BlockSpec((c_in_p, c_out_p), lambda i: (0, 0), **kw),      # resident
            pl.BlockSpec((1, c_out_p), lambda i: (0, 0), **kw),           # resident
            pl.BlockSpec((nh_buf, c_out_p, c_out_p),
                         lambda i: (0, 0, 0), **kw),                      # resident
            pl.BlockSpec((nh_buf, 1, c_out_p), lambda i: (0, 0, 0), **kw),# resident
        ]

    def run(in_specs):
        return pl.pallas_call(
            functools.partial(_mlp_kernel, num_hidden=num_hidden, unroll=unroll),
            out_shape=jax.ShapeDtypeStruct((m_pad, c_out_p), out_dtype),
            grid=grid,
            in_specs=in_specs,
            out_specs=pl.BlockSpec((tm, c_out_p), lambda i: (i, 0)),      # lane-dense
            compiler_params=pltpu.CompilerParams(
                dimension_semantics=("parallel",),
                vmem_limit_bytes=vmem_limit,
            ),
            cost_estimate=cost,
        )(x2d, w0, b0, wl, bl)

    try:
        # Single-buffer the resident weight stack (constant index_maps).
        out = run(build_in_specs(pl.Buffered(buffer_count=1)))
    except Exception:
        # TODO(synk): fallback for jax builds that reject single-buffered specs.
        out = run(build_in_specs(None))

    if m_pad != m or c_out_p != c_out:
        out = out[:m, :c_out]                 # skip the extra HBM pass when aligned
    return out.reshape(*lead, c_out)


def init_params(key, in_channels, out_channels, num_layers):
    """Deterministic init mirroring MLP.reset_parameters (kaiming_uniform a=sqrt(5),
    uniform biases in [-1/sqrt(in_channels), 1/sqrt(in_channels)])."""
    k0, k1, k2, k3 = jax.random.split(key, 4)
    bound_bias = math.sqrt(1.0 / in_channels)
    fan_in_w0 = out_channels                     # torch fan_in = size(1) for 2D
    fan_in_wl = out_channels * out_channels      # 3D: size(1) * receptive_field
    w0 = jax.random.uniform(k0, (in_channels, out_channels), jnp.float32,
                            -math.sqrt(1.0 / fan_in_w0), math.sqrt(1.0 / fan_in_w0))
    wl = jax.random.uniform(k1, (num_layers - 1, out_channels, out_channels),
                            jnp.float32,
                            -math.sqrt(1.0 / fan_in_wl), math.sqrt(1.0 / fan_in_wl))
    b0 = jax.random.uniform(k2, (out_channels,), jnp.float32, -bound_bias, bound_bias)
    bl = jax.random.uniform(k3, (num_layers - 1, out_channels), jnp.float32,
                            -bound_bias, bound_bias)
    return w0, b0, wl, bl


def mlp_reference(x, w0, b0, wl, bl):
    """Pure-JAX f32 reference for correctness checking."""
    h = jnp.matmul(x, w0) + b0
    for layer in range(wl.shape[0]):
        h = jnp.maximum(h, 0.0)
        h = jnp.matmul(h, wl[layer]) + bl[layer]
    return h


if __name__ == "__main__":
    key = jax.random.PRNGKey(0)
    kx, kp, kp2 = jax.random.split(key, 3)

    batch, seq = 2, 8
    in_channels, out_channels, num_layers = 16, 32, 3

    x = jax.random.normal(kx, (batch, seq, in_channels), jnp.float32)
    w0, b0, wl, bl = init_params(kp, in_channels, out_channels, num_layers)
    y_ref = mlp_reference(x, w0, b0, wl, bl)

    # f32 operand / f32 output path: near bit-accurate vs the reference.
    y_f32 = jax.block_until_ready(
        mlp_forward(x, w0, b0, wl, bl, compute_dtype=jnp.float32))
    assert y_f32.shape == (batch, seq, out_channels)
    assert jnp.allclose(y_f32, y_ref, atol=1e-5, rtol=1e-5), "f32 mismatch vs reference"

    # bf16 operand / f32 accumulate path (MXU-native fast path).
    y_bf16 = jax.block_until_ready(
        mlp_forward(x, w0, b0, wl, bl, compute_dtype=jnp.bfloat16))
    assert y_bf16.shape == (batch, seq, out_channels)
    assert jnp.allclose(y_bf16, y_ref, atol=3e-2, rtol=3e-2), "bf16 mismatch vs reference"

    # Deep MLP: exercises the in-kernel fori_loop layer path and bf16 writeback.
    deep_layers = 8
    w0d, b0d, wld, bld = init_params(kp2, in_channels, out_channels, deep_layers)
    y_deep_ref = mlp_reference(x, w0d, b0d, wld, bld)
    y_deep = jax.block_until_ready(
        mlp_forward(x, w0d, b0d, wld, bld,
                    compute_dtype=jnp.float32, out_dtype=jnp.bfloat16))
    assert y_deep.shape == (batch, seq, out_channels)
    assert y_deep.dtype == jnp.bfloat16
    assert jnp.allclose(y_deep.astype(jnp.float32), y_deep_ref,
                        atol=2e-2, rtol=2e-2), "deep-MLP mismatch vs reference"

    print("KERNEL_OK")
</pallas_src>

<mosaic_0001>
module attributes {stable_mosaic.version = 11 : i64} {
  func.func @_mlp_kernel(%arg0: i32, %arg1: memref<16x128xf32, #tpu.memory_space<vmem>>, %arg2: memref<128x128xf32, #tpu.memory_space<vmem>>, %arg3: memref<1x128xf32, #tpu.memory_space<vmem>>, %arg4: memref<2x128x128xf32, #tpu.memory_space<vmem>>, %arg5: memref<2x1x128xf32, #tpu.memory_space<vmem>>, %arg6: memref<16x128xf32, #tpu.memory_space<vmem>>) attributes {dimension_semantics = [#tpu.dimension_semantics<parallel>], iteration_bounds = array<i64: 1>, scalar_prefetch = 0 : i64, scratch_operands = 0 : i64, tpu.core_type = #tpu.core_type<tc>, window_params = [{transform_indices = @transform_0, window_bounds = array<i64: 16, 128>}, {pipeline_mode = #tpu.pipeline_mode<synchronous>, transform_indices = @transform_1, window_bounds = array<i64: 128, 128>}, {pipeline_mode = #tpu.pipeline_mode<synchronous>, transform_indices = @transform_2, window_bounds = array<i64: 1, 128>}, {pipeline_mode = #tpu.pipeline_mode<synchronous>, transform_indices = @transform_3, window_bounds = array<i64: 2, 128, 128>}, {pipeline_mode = #tpu.pipeline_mode<synchronous>, transform_indices = @transform_4, window_bounds = array<i64: 2, 1, 128>}, {transform_indices = @transform_5, window_bounds = array<i64: 16, 128>}]} {
    %c0 = arith.constant 0 : index
    %c0_0 = arith.constant 0 : index
    %0 = vector.load %arg1[%c0, %c0_0] : memref<16x128xf32, #tpu.memory_space<vmem>>, vector<16x128xf32>
    %c0_1 = arith.constant 0 : index
    %c0_2 = arith.constant 0 : index
    %1 = vector.load %arg2[%c0_1, %c0_2] : memref<128x128xf32, #tpu.memory_space<vmem>>, vector<128x128xf32>
    %cst = arith.constant dense<0.000000e+00> : vector<16x128xf32>
    %2 = tpu.matmul %0, %1, %cst {dimension_numbers = #tpu.dot_dimension_numbers<[1], [0], [0], [1], [0, 0, 1, 1], [], []>} : vector<16x128xf32>, vector<128x128xf32>, vector<16x128xf32> -> vector<16x128xf32>
    %c0_3 = arith.constant 0 : index
    %c0_4 = arith.constant 0 : index
    %3 = vector.load %arg3[%c0_3, %c0_4] : memref<1x128xf32, #tpu.memory_space<vmem>>, vector<1x128xf32>
    %4 = vector.broadcast %3 : vector<1x128xf32> to vector<16x128xf32>
    %5 = arith.addf %2, %4 : vector<16x128xf32>
    %cst_5 = arith.constant 0.000000e+00 : f32
    %6 = vector.broadcast %cst_5 : f32 to vector<16x128xf32>
    %7 = arith.maximumf %5, %6 : vector<16x128xf32>
    %c0_6 = arith.constant 0 : index
    %c0_7 = arith.constant 0 : index
    %c0_8 = arith.constant 0 : index
    %8 = vector.load %arg4[%c0_6, %c0_7, %c0_8] : memref<2x128x128xf32, #tpu.memory_space<vmem>>, vector<1x128x128xf32>
    %9 = vector.shape_cast %8 : vector<1x128x128xf32> to vector<128x128xf32>
    %cst_9 = arith.constant dense<0.000000e+00> : vector<16x128xf32>
    %10 = tpu.matmul %7, %9, %cst_9 {dimension_numbers = #tpu.dot_dimension_numbers<[1], [0], [0], [1], [0, 0, 1, 1], [], []>} : vector<16x128xf32>, vector<128x128xf32>, vector<16x128xf32> -> vector<16x128xf32>
    %c0_10 = arith.constant 0 : index
    %c0_11 = arith.constant 0 : index
    %c0_12 = arith.constant 0 : index
    %11 = vector.load %arg5[%c0_10, %c0_11, %c0_12] : memref<2x1x128xf32, #tpu.memory_space<vmem>>, vector<1x1x128xf32>
    %12 = vector.shape_cast %11 : vector<1x1x128xf32> to vector<1x128xf32>
    %13 = vector.broadcast %12 : vector<1x128xf32> to vector<16x128xf32>
    %14 = arith.addf %10, %13 : vector<16x128xf32>
    %cst_13 = arith.constant 0.000000e+00 : f32
    %15 = vector.broadcast %cst_13 : f32 to vector<16x128xf32>
    %16 = arith.maximumf %14, %15 : vector<16x128xf32>
    %c1 = arith.constant 1 : index
    %c0_14 = arith.constant 0 : index
    %c0_15 = arith.constant 0 : index
    %17 = vector.load %arg4[%c1, %c0_14, %c0_15] : memref<2x128x128xf32, #tpu.memory_space<vmem>>, vector<1x128x128xf32>
    %18 = vector.shape_cast %17 : vector<1x128x128xf32> to vector<128x128xf32>
    %cst_16 = arith.constant dense<0.000000e+00> : vector<16x128xf32>
    %19 = tpu.matmul %16, %18, %cst_16 {dimension_numbers = #tpu.dot_dimension_numbers<[1], [0], [0], [1], [0, 0, 1, 1], [], []>} : vector<16x128xf32>, vector<128x128xf32>, vector<16x128xf32> -> vector<16x128xf32>
    %c1_17 = arith.constant 1 : index
    %c0_18 = arith.constant 0 : index
    %c0_19 = arith.constant 0 : index
    %20 = vector.load %arg5[%c1_17, %c0_18, %c0_19] : memref<2x1x128xf32, #tpu.memory_space<vmem>>, vector<1x1x128xf32>
    %21 = vector.shape_cast %20 : vector<1x1x128xf32> to vector<1x128xf32>
    %22 = vector.broadcast %21 : vector<1x128xf32> to vector<16x128xf32>
    %23 = arith.addf %19, %22 : vector<16x128xf32>
    %c0_20 = arith.constant 0 : index
    %c0_21 = arith.constant 0 : index
    %24 = vector.load %arg6[%c0_20, %c0_21] : memref<16x128xf32, #tpu.memory_space<vmem>>, vector<16x128xf32>
    tpu.vector_store %arg6[%c0_20, %c0_21], %23 {strides = array<i32>} : memref<16x128xf32, #tpu.memory_space<vmem>>, vector<16x128xf32>,
    return
  }
  func.func @transform_0(%arg0: i32) -> (i32, i32) {
    %c0_i32 = arith.constant 0 : i32
    %c0_i32_0 = arith.constant 0 : i32
    return %arg0, %c0_i32 : i32, i32
  }
  func.func @transform_1(%arg0: i32) -> (i32, i32) {
    %c0_i32 = arith.constant 0 : i32
    %c0_i32_0 = arith.constant 0 : i32
    %c0_i32_1 = arith.constant 0 : i32
    return %c0_i32, %c0_i32_0 : i32, i32
  }
  func.func @transform_2(%arg0: i32) -> (i32, i32) {
    %c0_i32 = arith.constant 0 : i32
    %c0_i32_0 = arith.constant 0 : i32
    %c0_i32_1 = arith.constant 0 : i32
    return %c0_i32, %c0_i32_0 : i32, i32
  }
  func.func @transform_3(%arg0: i32) -> (i32, i32, i32) {
    %c0_i32 = arith.constant 0 : i32
    %c0_i32_0 = arith.constant 0 : i32
    %c0_i32_1 = arith.constant 0 : i32
    %c0_i32_2 = arith.constant 0 : i32
    return %c0_i32, %c0_i32_0, %c0_i32_1 : i32, i32, i32
  }
  func.func @transform_4(%arg0: i32) -> (i32, i32, i32) {
    %c0_i32 = arith.constant 0 : i32
    %c0_i32_0 = arith.constant 0 : i32
    %c0_i32_1 = arith.constant 0 : i32
    %c0_i32_2 = arith.constant 0 : i32
    return %c0_i32, %c0_i32_0, %c0_i32_1 : i32, i32, i32
  }
  func.func @transform_5(%arg0: i32) -> (i32, i32) {
    %c0_i32 = arith.constant 0 : i32
    %c0_i32_0 = arith.constant 0 : i32
    return %arg0, %c0_i32 : i32, i32
  }
}

module attributes {stable_mosaic.version = 11 : i64} {
  func.func @_mlp_kernel(%arg0: i32, %arg1: memref<16x128xf32, #tpu.memory_space<vmem>>, %arg2: memref<128x128xf32, #tpu.memory_space<vmem>>, %arg3: memref<1x128xf32, #tpu.memory_space<vmem>>, %arg4: memref<2x128x128xf32, #tpu.memory_space<vmem>>, %arg5: memref<2x1x128xf32, #tpu.memory_space<vmem>>, %arg6: memref<16x128xf32, #tpu.memory_space<vmem>>) attributes {dimension_semantics = [#tpu.dimension_semantics<parallel>], iteration_bounds = array<i64: 1>, scalar_prefetch = 0 : i64, scratch_operands = 0 : i64, tpu.core_type = #tpu.core_type<tc>, window_params = [{transform_indices = @transform_0, window_bounds = array<i64: 16, 128>}, {pipeline_mode = #tpu.pipeline_mode<synchronous>, transform_indices = @transform_1, window_bounds = array<i64: 128, 128>}, {pipeline_mode = #tpu.pipeline_mode<synchronous>, transform_indices = @transform_2, window_bounds = array<i64: 1, 128>}, {pipeline_mode = #tpu.pipeline_mode<synchronous>, transform_indices = @transform_3, window_bounds = array<i64: 2, 128, 128>}, {pipeline_mode = #tpu.pipeline_mode<synchronous>, transform_indices = @transform_4, window_bounds = array<i64: 2, 1, 128>}, {transform_indices = @transform_5, window_bounds = array<i64: 16, 128>}]} {
    %c0 = arith.constant 0 : index
    %c0_0 = arith.constant 0 : index
    %0 = vector.load %arg1[%c0, %c0_0] : memref<16x128xf32, #tpu.memory_space<vmem>>, vector<16x128xf32>
    %c0_1 = arith.constant 0 : index
    %c0_2 = arith.constant 0 : index
    %1 = vector.load %arg2[%c0_1, %c0_2] : memref<128x128xf32, #tpu.memory_space<vmem>>, vector<128x128xf32>
    %cst = arith.constant dense<0.000000e+00> : vector<16x128xf32>
    %2 = tpu.matmul %0, %1, %cst {dimension_numbers = #tpu.dot_dimension_numbers<[1], [0], [0], [1], [0, 0, 1, 1], [], []>} : vector<16x128xf32>, vector<128x128xf32>, vector<16x128xf32> -> vector<16x128xf32>
    %c0_3 = arith.constant 0 : index
    %c0_4 = arith.constant 0 : index
    %3 = vector.load %arg3[%c0_3, %c0_4] : memref<1x128xf32, #tpu.memory_space<vmem>>, vector<1x128xf32>
    %4 = vector.broadcast %3 : vector<1x128xf32> to vector<16x128xf32>
    %5 = arith.addf %2, %4 : vector<16x128xf32>
    %cst_5 = arith.constant 0.000000e+00 : f32
    %6 = vector.broadcast %cst_5 : f32 to vector<16x128xf32>
    %7 = arith.maximumf %5, %6 : vector<16x128xf32>
    %c0_6 = arith.constant 0 : index
    %c0_7 = arith.constant 0 : index
    %c0_8 = arith.constant 0 : index
    %8 = vector.load %arg4[%c0_6, %c0_7, %c0_8] : memref<2x128x128xf32, #tpu.memory_space<vmem>>, vector<1x128x128xf32>
    %9 = vector.shape_cast %8 : vector<1x128x128xf32> to vector<128x128xf32>
    %cst_9 = arith.constant dense<0.000000e+00> : vector<16x128xf32>
    %10 = tpu.matmul %7, %9, %cst_9 {dimension_numbers = #tpu.dot_dimension_numbers<[1], [0], [0], [1], [0, 0, 1, 1], [], []>} : vector<16x128xf32>, vector<128x128xf32>, vector<16x128xf32> -> vector<16x128xf32>
    %c0_10 = arith.constant 0 : index
    %c0_11 = arith.constant 0 : index
    %c0_12 = arith.constant 0 : index
    %11 = vector.load %arg5[%c0_10, %c0_11, %c0_12] : memref<2x1x128xf32, #tpu.memory_space<vmem>>, vector<1x1x128xf32>
    %12 = vector.shape_cast %11 : vector<1x1x128xf32> to vector<1x128xf32>
    %13 = vector.broadcast %12 : vector<1x128xf32> to vector<16x128xf32>
    %14 = arith.addf %10, %13 : vector<16x128xf32>
    %cst_13 = arith.constant 0.000000e+00 : f32
    %15 = vector.broadcast %cst_13 : f32 to vector<16x128xf32>
    %16 = arith.maximumf %14, %15 : vector<16x128xf32>
    %c1 = arith.constant 1 : index
    %c0_14 = arith.constant 0 : index
    %c0_15 = arith.constant 0 : index
    %17 = vector.load %arg4[%c1, %c0_14, %c0_15] : memref<2x128x128xf32, #tpu.memory_space<vmem>>, vector<1x128x128xf32>
    %18 = vector.shape_cast %17 : vector<1x128x128xf32> to vector<128x128xf32>
    %cst_16 = arith.constant dense<0.000000e+00> : vector<16x128xf32>
    %19 = tpu.matmul %16, %18, %cst_16 {dimension_numbers = #tpu.dot_dimension_numbers<[1], [0], [0], [1], [0, 0, 1, 1], [], []>} : vector<16x128xf32>, vector<128x128xf32>, vector<16x128xf32> -> vector<16x128xf32>
    %c1_17 = arith.constant 1 : index
    %c0_18 = arith.constant 0 : index
    %c0_19 = arith.constant 0 : index
    %20 = vector.load %arg5[%c1_17, %c0_18, %c0_19] : memref<2x1x128xf32, #tpu.memory_space<vmem>>, vector<1x1x128xf32>
    %21 = vector.shape_cast %20 : vector<1x1x128xf32> to vector<1x128xf32>
    %22 = vector.broadcast %21 : vector<1x128xf32> to vector<16x128xf32>
    %23 = arith.addf %19, %22 : vector<16x128xf32>
    %c0_20 = arith.constant 0 : index
    %c0_21 = arith.constant 0 : index
    %24 = vector.load %arg6[%c0_20, %c0_21] : memref<16x128xf32, #tpu.memory_space<vmem>>, vector<16x128xf32>
    tpu.vector_store %arg6[%c0_20, %c0_21], %23 {strides = array<i32>} : memref<16x128xf32, #tpu.memory_space<vmem>>, vector<16x128xf32>,
    return
  }
  func.func @transform_0(%arg0: i32) -> (i32, i32) {
    %c0_i32 = arith.constant 0 : i32
    %c0_i32_0 = arith.constant 0 : i32
    return %arg0, %c0_i32 : i32, i32
  }
  func.func @transform_1(%arg0: i32) -> (i32, i32) {
    %c0_i32 = arith.constant 0 : i32
    %c0_i32_0 = arith.constant 0 : i32
    %c0_i32_1 = arith.constant 0 : i32
    return %c0_i32, %c0_i32_0 : i32, i32
  }
  func.func @transform_2(%arg0: i32) -> (i32, i32) {
    %c0_i32 = arith.constant 0 : i32
    %c0_i32_0 = arith.constant 0 : i32
    %c0_i32_1 = arith.constant 0 : i32
    return %c0_i32, %c0_i32_0 : i32, i32
  }
  func.func @transform_3(%arg0: i32) -> (i32, i32, i32) {
    %c0_i32 = arith.constant 0 : i32
    %c0_i32_0 = arith.constant 0 : i32
    %c0_i32_1 = arith.constant 0 : i32
    %c0_i32_2 = arith.constant 0 : i32
    return %c0_i32, %c0_i32_0, %c0_i32_1 : i32, i32, i32
  }
  func.func @transform_4(%arg0: i32) -> (i32, i32, i32) {
    %c0_i32 = arith.constant 0 : i32
    %c0_i32_0 = arith.constant 0 : i32
    %c0_i32_1 = arith.constant 0 : i32
    %c0_i32_2 = arith.constant 0 : i32
    return %c0_i32, %c0_i32_0, %c0_i32_1 : i32, i32, i32
  }
  func.func @transform_5(%arg0: i32) -> (i32, i32) {
    %c0_i32 = arith.constant 0 : i32
    %c0_i32_0 = arith.constant 0 : i32
    return %arg0, %c0_i32 : i32, i32
  }
}

</mosaic_0001>

<bundles_post_ra>
// kernel: tpu_custom_call.1
= control target key start
LH: loop header
LB: loop body
LE: loop exit
PB: predicated region body
PF: predicated region fallthrough
CT: control target
= control target key end

     0   :  { %10 = vsyncpa [#allocation3], 0  ;;  %s855_s0 = inlined_call_operand.hbm [shape: f32[16,128], index: 0, kind: input, shape index: {}]   ;;  %s856_s1 = inlined_call_operand.hbm [shape: f32[128,128], index: 1, kind: input, shape index: {}]   ;;  %s857_s2 = inlined_call_operand.vmem [shape: f32[1,128], index: 2, kind: input, shape index: {}]   ;;  %s858_s3 = inlined_call_operand.hbm [shape: f32[2,128,128], index: 3, kind: input, shape index: {}]   ;;  %s859_s4 = inlined_call_operand.vmem [shape: f32[2,1,128], index: 4, kind: input, shape index: {}]   ;;  %s860_s5 = inlined_call_operand.hbm [shape: f32[16,128], index: 5, kind: output, shape index: {}]  }
   0x1   :  { %11 = vsyncpa [#allocation6], 0 }
   0x2   :  { %12 = vsyncpa [#allocation4], 0  ;;  %s743_s18 = smov [#allocation5]   ;;  %s744_s20 = smov [#allocation2]  }
   0x3   :  { %s30_s19 = sshll.u32 %s743_s18, 4  ;;  %s18_s21 = sshll.u32 %s744_s20, 4  ;;  %s31_s19 = int_to_ptr.vmem [resolvable:$true] %s30_s19  ;;  %s779_s21 = int_to_ptr.vmem [resolvable:$true] %s18_s21 }
   0x4   :  { %s649_s24 = scalar_lea.hbm %s856_s1, 2048 }
   0x5   :  { %p650_p0 = scmp.ne.s32.totalorder %s856_s1, %s649_s24  ;;  %p653_p1 = scmp.lt.u32.totalorder %s649_s24, %s856_s1 }
   0x7   :  { %p655_p2 = pnand %p653_p1, %p650_p0 }
   0x9   :  { %658 = shalt.err (!%p655_p2)
}
   0xa   :  { %s659_s29 = scalar_lea.vmem %s31_s19, 2048  ;;  %p664_p4 = scmp.lt.s32.totalorder %s31_s19, %s31_s19 }
   0xb   :  { %p660_p3 = scmp.ne.s32.totalorder %s31_s19, %s659_s29  ;;  %p665_p5 = scmp.lt.s32.totalorder %s659_s29, %s659_s29 }
   0xd   :  { %p666_p6 = por %p665_p5, %p664_p4 }
   0xf   :  { %p667_p7 = pnand %p666_p6, %p660_p3 }
  0x11   :  { %670 = shalt.err (!%p667_p7)
}
  0x12   :  { %s745_s30 = smov 128   ;;  %s746_s6 = smov 8  }
  0x13   :  { %36 = dma.hbm_to_vmem [thread:$0]  %s856_s1, 2048, %s31_s19, [#allocation6], %s745_s30, %s745_s30, %s746_s6  }
  0x14   :  { %s671_s11 = scalar_lea.hbm %s855_s0, 256 }
  0x15   :  { %p672_p8 = scmp.ne.s32.totalorder %s855_s0, %s671_s11  ;;  %p675_p9 = scmp.lt.u32.totalorder %s671_s11, %s855_s0 }
  0x17   :  { %p677_p10 = pnand %p675_p9, %p672_p8 }
  0x19   :  { %680 = shalt.err (!%p677_p10)
}
  0x1a   :  { %s681_s16 = scalar_lea.vmem %s779_s21, 256  ;;  %p686_p12 = scmp.lt.s32.totalorder %s779_s21, %s779_s21 }
  0x1b   :  { %p682_p11 = scmp.ne.s32.totalorder %s779_s21, %s681_s16  ;;  %p687_p13 = scmp.lt.s32.totalorder %s681_s16, %s681_s16 }
  0x1d   :  { %p688_p0 = por %p687_p13, %p686_p12 }
  0x1f   :  { %p689_p1 = pnand %p688_p0, %p682_p11 }
  0x21   :  { %692 = shalt.err (!%p689_p1)
}
  0x22   :  { %24 = dma.hbm_to_vmem [thread:$0]  %s855_s0, 256, %s779_s21, [#allocation3], %s745_s30, %s745_s30, %s746_s6  }
  0x23   :  { %s747_s18 = smov [#allocation7]   ;;  %s693_s23 = scalar_lea.hbm %s858_s3, 4096 }
  0x24   :  { %s44_s19 = sshll.u32 %s747_s18, 4  ;;  %p694_p2 = scmp.ne.s32.totalorder %s858_s3, %s693_s23  ;;  %s45_s19 = int_to_ptr.vmem [resolvable:$true] %s44_s19 }
  0x25   :  { %p697_p3 = scmp.lt.u32.totalorder %s693_s23, %s858_s3 }
  0x27   :  { %p699_p4 = pnand %p697_p3, %p694_p2 }
  0x29   :  { %702 = shalt.err (!%p699_p4)
}
  0x2a   :  { %s703_s28 = scalar_lea.vmem %s45_s19, 4096  ;;  %p708_p6 = scmp.lt.s32.totalorder %s45_s19, %s45_s19 }
  0x2b   :  { %p704_p5 = scmp.ne.s32.totalorder %s45_s19, %s703_s28  ;;  %p709_p7 = scmp.lt.s32.totalorder %s703_s28, %s703_s28 }
  0x2d   :  { %p710_p8 = por %p709_p7, %p708_p6 }
  0x2f   :  { %p711_p9 = pnand %p710_p8, %p704_p5 }
  0x31   :  { %714 = shalt.err (!%p711_p9)
}
  0x32   :  { %50 = dma.hbm_to_vmem [thread:$0]  %s858_s3, 4096, %s45_s19, [#allocation6], %s745_s30, %s745_s30, %s746_s6  }
  0x33   :  { %737 = dma.done.wait [#allocation3], 256  }
  0x34   :  { %738 = vsyncadd [#allocation3], 4294967040 }
  0x35   :  { %739 = dma.done.wait [#allocation6], 6144  }
  0x36   :  { %740 = vsyncadd [#allocation6], 4294961152  ;;  %v64_v0 = vld [vmem:[#allocation5] sm:$0xff]  ;;  %v65_v1 = vld [vmem:[#allocation5 + $0x8] sm:$0xff]  ;;  %s748_s10 = smov [#allocation8]  }
  0x37   :  { %v66_v2 = vld [vmem:[#allocation5 + $0x10] sm:$0xff]  ;;  %v547_v3 = vpack.c.bf16 %v65_v1, %v64_v0  ;;  %v67_v4 = vld [vmem:[#allocation5 + $0x18] sm:$0xff]  ;;  %v68_v6 = vld [vmem:[#allocation5 + $0x20] sm:$0xff]  ;;  %s371_s11 = sshll.u32 %s748_s10, 4  ;;  %s372_s11 = int_to_ptr.vmem [resolvable:$true] %s371_s11 }
  0x38   :  { %v551_v5 = vpack.c.bf16 %v67_v4, %v66_v2  ;;  %v69_v7 = vld [vmem:[#allocation5 + $0x28] sm:$0xff]  ;;  %v70_v9 = vld [vmem:[#allocation5 + $0x30] sm:$0xff]  ;;  %v71_v10 = vld [vmem:[#allocation5 + $0x38] sm:$0xff]  ;;  %s715_s12 = scalar_lea.vmem %s372_s11, 256  ;;  %p720_p11 = scmp.lt.s32.totalorder %s372_s11, %s372_s11 }
  0x39   :  { %548 = vmatprep.subr.bf16.mxu0 %v547_v3  ;;  %v555_v8 = vpack.c.bf16 %v69_v7, %v68_v6  ;;  %v62_v11 = vld [vmem:[#allocation2] sm:$0xff]  ;;  %v164_v12 = vld [vmem:[#allocation7] sm:$0xff]  ;;  %v165_v13 = vld [vmem:[#allocation7 + $0x8] sm:$0xff]  ;;  %v559_v20 = vpack.c.bf16 %v71_v10, %v70_v9  ;;  %p716_p10 = scmp.ne.s32.totalorder %s372_s11, %s715_s12  ;;  %p721_p12 = scmp.lt.s32.totalorder %s715_s12, %s715_s12 }
  0x3a   :  { %550 = vmatpush3.bf16.msra.mxu0 %v547_v3  ;;  %474 = vmatprep.mubr.f32.mxu0 %v62_v11  ;;  %v166_v14 = vld [vmem:[#allocation7 + $0x10] sm:$0xff]  ;;  %v579_v15 = vpack.c.bf16 %v165_v13, %v164_v12  ;;  %v167_v16 = vld [vmem:[#allocation7 + $0x18] sm:$0xff]  ;;  %v168_v18 = vld [vmem:[#allocation7 + $0x20] sm:$0xff] }
  0x3b   :  { %552 = vmatprep.subr.bf16.mxu0 %v551_v5  ;;  %v583_v17 = vpack.c.bf16 %v167_v16, %v166_v14  ;;  %v169_v19 = vld [vmem:[#allocation7 + $0x28] sm:$0xff]  ;;  %v72_v21 = vld [vmem:[#allocation5 + $0x40] sm:$0xff]  ;;  %v170_v24 = vld [vmem:[#allocation7 + $0x30] sm:$0xff]  ;;  %p722_p13 = por %p721_p12, %p720_p11 }
  0x3c   :  { %580 = vmatprep.subr.bf16.mxu1 %v579_v15  ;;  %v73_v22 = vld [vmem:[#allocation5 + $0x48] sm:$0xff]  ;;  %v587_v23 = vpack.c.bf16 %v169_v19, %v168_v18  ;;  %v171_v25 = vld [vmem:[#allocation7 + $0x38] sm:$0xff]  ;;  %v74_v27 = vld [vmem:[#allocation5 + $0x50] sm:$0xff] }
  0x3d   :  { %582 = vmatpush3.bf16.msra.mxu1 %v579_v15  ;;  %v563_v26 = vpack.c.bf16 %v73_v22, %v72_v21  ;;  %v75_v28 = vld [vmem:[#allocation5 + $0x58] sm:$0xff]  ;;  %v591_v29 = vpack.c.bf16 %v171_v25, %v170_v24  ;;  %v172_v30 = vld [vmem:[#allocation7 + $0x40] sm:$0xff]  ;;  %v173_v31 = vld [vmem:[#allocation7 + $0x48] sm:$0xff]  ;;  %p723_p0 = pnand %p722_p13, %p716_p10 }
  0x3e   :  { %554 = vmatpush3.bf16.msra.mxu0 %v551_v5  ;;  %584 = vmatprep.subr.bf16.mxu1 %v583_v17  ;;  %v567_v32 = vpack.c.bf16 %v75_v28, %v74_v27  ;;  %v76_v33 = vld [vmem:[#allocation5 + $0x60] sm:$0xff]  ;;  %v77_v34 = vld [vmem:[#allocation5 + $0x68] sm:$0xff]  ;;  %v595_v35 = vpack.c.bf16 %v173_v31, %v172_v30  ;;  %v174_v36 = vld [vmem:[#allocation7 + $0x50] sm:$0xff] }
  0x3f   :  { %556 = vmatprep.subr.bf16.mxu0 %v555_v8  ;;  %v175_v37 = vld [vmem:[#allocation7 + $0x58] sm:$0xff]  ;;  %v571_v38 = vpack.c.bf16 %v77_v34, %v76_v33  ;;  %v78_v39 = vld [vmem:[#allocation5 + $0x70] sm:$0xff]  ;;  %v176_v42 = vld [vmem:[#allocation7 + $0x60] sm:$0xff] }
  0x40   :  { %v79_v40 = vld [vmem:[#allocation5 + $0x78] sm:$0xff]  ;;  %v599_v41 = vpack.c.bf16 %v175_v37, %v174_v36  ;;  %v177_v43 = vld [vmem:[#allocation7 + $0x68] sm:$0xff]  ;;  %v178_v47 = vld [vmem:[#allocation7 + $0x70] sm:$0xff] }
  0x41   :  { %586 = vmatpush3.bf16.msra.mxu1 %v583_v17  ;;  %v575_v44 = vpack.c.bf16 %v79_v40, %v78_v39  ;;  %v603_v45 = vpack.c.bf16 %v177_v43, %v176_v42  ;;  %v63_v46 = vld [vmem:[#allocation2 + $0x8] sm:$0xff]  ;;  %v265_v50 = vld [vmem:[#allocation7 + $0x80] sm:$0xff]  ;;  %v266_v51 = vld [vmem:[#allocation7 + $0x88] sm:$0xff] }
  0x42   :  { %558 = vmatpush3.bf16.msra.mxu0 %v555_v8  ;;  %588 = vmatprep.subr.bf16.mxu1 %v587_v23  ;;  %v179_v48 = vld [vmem:[#allocation7 + $0x78] sm:$0xff]  ;;  %v267_v52 = vld [vmem:[#allocation7 + $0x90] sm:$0xff]  ;;  %v611_v53 = vpack.c.bf16 %v266_v51, %v265_v50  ;;  %v269_v56 = vld [vmem:[#allocation7 + $0xa0] sm:$0xff] }
  0x43   :  { %560 = vmatprep.subr.bf16.mxu0 %v559_v20  ;;  %v607_v49 = vpack.c.bf16 %v179_v48, %v178_v47  ;;  %v268_v54 = vld [vmem:[#allocation7 + $0x98] sm:$0xff]  ;;  %v270_v57 = vld [vmem:[#allocation7 + $0xa8] sm:$0xff]  ;;  %v271_v59 = vld [vmem:[#allocation7 + $0xb0] sm:$0xff] }
  0x44   :  { %v615_v55 = vpack.c.bf16 %v268_v54, %v267_v52  ;;  %v619_v58 = vpack.c.bf16 %v270_v57, %v269_v56  ;;  %v272_v60 = vld [vmem:[#allocation7 + $0xb8] sm:$0xff]  ;;  %v273_v62 = vld [vmem:[#allocation7 + $0xc0] sm:$0xff]  ;;  %v274_v63 = vld [vmem:[#allocation7 + $0xc8] sm:$0xff] }
  0x45   :  { %590 = vmatpush3.bf16.msra.mxu1 %v587_v23  ;;  %v623_v61 = vpack.c.bf16 %v272_v60, %v271_v59  ;;  %v627_v0 = vpack.c.bf16 %v274_v63, %v273_v62  ;;  %v275_v1 = vld [vmem:[#allocation7 + $0xd0] sm:$0xff]  ;;  %v276_v2 = vld [vmem:[#allocation7 + $0xd8] sm:$0xff]  ;;  %v277_v4 = vld [vmem:[#allocation7 + $0xe0] sm:$0xff] }
  0x46   :  { %562 = vmatpush3.bf16.msra.mxu0 %v559_v20  ;;  %592 = vmatprep.subr.bf16.mxu1 %v591_v29  ;;  %v631_v3 = vpack.c.bf16 %v276_v2, %v275_v1  ;;  %v278_v5 = vld [vmem:[#allocation7 + $0xe8] sm:$0xff]  ;;  %v384_v7 = vld [vmem:[%s857_s2] ss:$0 sm:$0xff]  ;;  %v280_v15 = vld [vmem:[#allocation7 + $0xf8] sm:$0xff] }
  0x47   :  { %564 = vmatprep.subr.bf16.mxu0 %v563_v26  ;;  %v635_v6 = vpack.c.bf16 %v278_v5, %v277_v4  ;;  %v279_v14 = vld [vmem:[#allocation7 + $0xf0] sm:$0xff] }
  0x48   :  { %v639_v16 = vpack.c.bf16 %v280_v15, %v279_v14  ;;  %v385_v17 = vld [vmem:[%s859_s4] ss:$0 sm:$0xff]  ;;  %v387_v24 = vld [vmem:[%s859_s4 + $0x1] ss:$0 sm:$0xff] }
  0x49   :  { %594 = vmatpush3.bf16.msra.mxu1 %v591_v29 }
  0x4a   :  { %566 = vmatpush3.bf16.msra.mxu0 %v563_v26  ;;  %596 = vmatprep.subr.bf16.mxu1 %v595_v35 }
  0x4b   :  { %568 = vmatprep.subr.bf16.mxu0 %v567_v32 }
  0x4d   :  { %598 = vmatpush3.bf16.msra.mxu1 %v595_v35 }
  0x4e   :  { %570 = vmatpush3.bf16.msra.mxu0 %v567_v32  ;;  %600 = vmatprep.subr.bf16.mxu1 %v599_v41 }
  0x4f   :  { %572 = vmatprep.subr.bf16.mxu0 %v571_v38 }
  0x51   :  { %602 = vmatpush3.bf16.msra.mxu1 %v599_v41 }
  0x52   :  { %574 = vmatpush3.bf16.msra.mxu0 %v571_v38  ;;  %604 = vmatprep.subr.bf16.mxu1 %v603_v45 }
  0x53   :  { %576 = vmatprep.subr.bf16.mxu0 %v575_v44 }
  0x55   :  { %606 = vmatpush3.bf16.msra.mxu1 %v603_v45 }
  0x56   :  { %578 = vmatpush3.bf16.msra.mxu0 %v575_v44  ;;  %608 = vmatprep.subr.bf16.mxu1 %v607_v49 }
  0x57   :  { %612 = vmatprep.subr.bf16.mxu0 %v611_v53 }
  0x59   :  { %475 = vmatmul.mubr.f32.vlgmr.msra.gmra.mrb[0].mxu0 %v63_v46  ;;  %610 = vmatpush3.bf16.msra.mxu1 %v607_v49 }
  0x5a   :  { %614 = vmatpush3.bf16.msra.mxu0 %v611_v53 }
  0x5b   :  { %616 = vmatprep.subr.bf16.mxu0 %v615_v55 }
  0x5e   :  { %618 = vmatpush3.bf16.msra.mxu0 %v615_v55 }
  0x5f   :  { %620 = vmatprep.subr.bf16.mxu0 %v619_v58 }
  0x62   :  { %622 = vmatpush3.bf16.msra.mxu0 %v619_v58 }
  0x63   :  { %624 = vmatprep.subr.bf16.mxu0 %v623_v61 }
  0x66   :  { %626 = vmatpush3.bf16.msra.mxu0 %v623_v61 }
  0x67   :  { %628 = vmatprep.subr.bf16.mxu0 %v627_v0 }
  0x6a   :  { %630 = vmatpush3.bf16.msra.mxu0 %v627_v0 }
  0x6b   :  { %632 = vmatprep.subr.bf16.mxu0 %v631_v3 }
  0x6e   :  { %634 = vmatpush3.bf16.msra.mxu0 %v631_v3 }
  0x6f   :  { %636 = vmatprep.subr.bf16.mxu0 %v635_v6 }
  0x72   :  { %638 = vmatpush3.bf16.msra.mxu0 %v635_v6 }
  0x73   :  { %640 = vmatprep.subr.bf16.mxu0 %v639_v16 }
  0x76   :  { %642 = vmatpush3.bf16.msra.mxu0 %v639_v16 }
 0x12c   :  { %v476_v8 = vpop.f32.mrb[0].mxu0 }
 0x12d   :  { %v159_v9 = vadd.f32 %v476_v8, %v384_v7  ;;  %v153_v10 = vpop.f32.mrb[1].mxu0 }
 0x12e   :  { %v154_v11 = vadd.f32 %v384_v7, %v153_v10 }
 0x12f   :  { %v163_v13 = vmax.f32 %v159_v9, 0.0 }
 0x130   :  { %v162_v12 = vmax.f32 %v154_v11, 0.0 }
 0x132   :  { %509 = vmatprep.mubr.f32.mxu1 %v162_v12 }
 0x133   :  { %510 = vmatmul.mubr.f32.vlgmr.msra.gmra.mrb[0].mxu1 %v163_v13 }
 0x206   :  { %v511_v18 = vpop.f32.mrb[0].mxu1 }
 0x207   :  { %v259_v19 = vadd.f32 %v511_v18, %v385_v17  ;;  %v253_v20 = vpop.f32.mrb[1].mxu1 }
 0x208   :  { %v254_v21 = vadd.f32 %v385_v17, %v253_v20 }
 0x209   :  { %v263_v23 = vmax.f32 %v259_v19, 0.0 }
 0x20a   :  { %v262_v22 = vmax.f32 %v254_v21, 0.0 }
 0x20c   :  { %544 = vmatprep.mubr.f32.mxu0 %v262_v22 }
 0x20d   :  { %545 = vmatmul.mubr.f32.vlgmr.msra.gmra.mrb[2].mxu0 %v263_v23 }
 0x2e0   :  { %v546_v25 = vpop.f32.mrb[2].mxu0 }
 0x2e1   :  { %v361_v26 = vadd.f32 %v546_v25, %v387_v24  ;;  %v355_v27 = vpop.f32.mrb[3].mxu0 }
 0x2e2   :  { %v356_v28 = vadd.f32 %v387_v24, %v355_v27 }
 0x2e3   :  { %365 = vst [vmem:[#allocation8 + $0x8] sm:$0xff] %v361_v26 }
 0x2e4   :  { %364 = vst [vmem:[#allocation8] sm:$0xff] %v356_v28 }
 0x2e5   :  { %726 = shalt.err (!%p723_p0)
}
 0x2e6   :  { %s727_s4 = scalar_lea.hbm %s860_s5, 256 }
 0x2e7   :  { %p728_p1 = scmp.ne.s32.totalorder %s860_s5, %s727_s4  ;;  %p731_p2 = scmp.lt.u32.totalorder %s727_s4, %s860_s5 }
 0x2e9   :  { %p733_p3 = pnand %p731_p2, %p728_p1 }
 0x2eb   :  { %736 = shalt.err (!%p733_p3)
}
 0x2ec   :  { %377 = dma.vmem_to_hbm [thread:$0]  %s372_s11, 256, %s860_s5, [#allocation4], %s745_s30, %s745_s30, %s746_s6  }
 0x2ed   :  { %741 = dma.done.wait [#allocation4], 256  }
 0x2ee   :  { %742 = vsyncadd [#allocation4], 4294967040 }
 0x2ef   :  { %381 = vsyncpa [#allocation3], 1 }
 0x2f0   :  { %382 = vsyncpa [#allocation6], 1 }
 0x2f1   :  { %383 = vsyncpa [#allocation4], 1 }

// kernel: tpu_custom_call.1
= control target key start
LH: loop header
LB: loop body
LE: loop exit
PB: predicated region body
PF: predicated region fallthrough
CT: control target
= control target key end

     0   :  { %10 = vsyncpa [#allocation3], 0  ;;  %s855_s0 = inlined_call_operand.hbm [shape: f32[16,128], index: 0, kind: input, shape index: {}]   ;;  %s856_s1 = inlined_call_operand.hbm [shape: f32[128,128], index: 1, kind: input, shape index: {}]   ;;  %s857_s2 = inlined_call_operand.vmem [shape: f32[1,128], index: 2, kind: input, shape index: {}]   ;;  %s858_s3 = inlined_call_operand.hbm [shape: f32[2,128,128], index: 3, kind: input, shape index: {}]   ;;  %s859_s4 = inlined_call_operand.vmem [shape: f32[2,1,128], index: 4, kind: input, shape index: {}]   ;;  %s860_s5 = inlined_call_operand.hbm [shape: f32[16,128], index: 5, kind: output, shape index: {}]  }
   0x1   :  { %11 = vsyncpa [#allocation6], 0 }
   0x2   :  { %12 = vsyncpa [#allocation4], 0  ;;  %s743_s18 = smov [#allocation5]   ;;  %s744_s20 = smov [#allocation2]  }
   0x3   :  { %s30_s19 = sshll.u32 %s743_s18, 4  ;;  %s18_s21 = sshll.u32 %s744_s20, 4  ;;  %s31_s19 = int_to_ptr.vmem [resolvable:$true] %s30_s19  ;;  %s779_s21 = int_to_ptr.vmem [resolvable:$true] %s18_s21 }
   0x4   :  { %s649_s24 = scalar_lea.hbm %s856_s1, 2048 }
   0x5   :  { %p650_p0 = scmp.ne.s32.totalorder %s856_s1, %s649_s24  ;;  %p653_p1 = scmp.lt.u32.totalorder %s649_s24, %s856_s1 }
   0x7   :  { %p655_p2 = pnand %p653_p1, %p650_p0 }
   0x9   :  { %658 = shalt.err (!%p655_p2)
}
   0xa   :  { %s659_s29 = scalar_lea.vmem %s31_s19, 2048  ;;  %p664_p4 = scmp.lt.s32.totalorder %s31_s19, %s31_s19 }
   0xb   :  { %p660_p3 = scmp.ne.s32.totalorder %s31_s19, %s659_s29  ;;  %p665_p5 = scmp.lt.s32.totalorder %s659_s29, %s659_s29 }
   0xd   :  { %p666_p6 = por %p665_p5, %p664_p4 }
   0xf   :  { %p667_p7 = pnand %p666_p6, %p660_p3 }
  0x11   :  { %670 = shalt.err (!%p667_p7)
}
  0x12   :  { %s745_s30 = smov 128   ;;  %s746_s6 = smov 8  }
  0x13   :  { %36 = dma.hbm_to_vmem [thread:$0]  %s856_s1, 2048, %s31_s19, [#allocation6], %s745_s30, %s745_s30, %s746_s6  }
  0x14   :  { %s671_s11 = scalar_lea.hbm %s855_s0, 256 }
  0x15   :  { %p672_p8 = scmp.ne.s32.totalorder %s855_s0, %s671_s11  ;;  %p675_p9 = scmp.lt.u32.totalorder %s671_s11, %s855_s0 }
  0x17   :  { %p677_p10 = pnand %p675_p9, %p672_p8 }
  0x19   :  { %680 = shalt.err (!%p677_p10)
}
  0x1a   :  { %s681_s16 = scalar_lea.vmem %s779_s21, 256  ;;  %p686_p12 = scmp.lt.s32.totalorder %s779_s21, %s779_s21 }
  0x1b   :  { %p682_p11 = scmp.ne.s32.totalorder %s779_s21, %s681_s16  ;;  %p687_p13 = scmp.lt.s32.totalorder %s681_s16, %s681_s16 }
  0x1d   :  { %p688_p0 = por %p687_p13, %p686_p12 }
  0x1f   :  { %p689_p1 = pnand %p688_p0, %p682_p11 }
  0x21   :  { %692 = shalt.err (!%p689_p1)
}
  0x22   :  { %24 = dma.hbm_to_vmem [thread:$0]  %s855_s0, 256, %s779_s21, [#allocation3], %s745_s30, %s745_s30, %s746_s6  }
  0x23   :  { %s747_s18 = smov [#allocation7]   ;;  %s693_s23 = scalar_lea.hbm %s858_s3, 4096 }
  0x24   :  { %s44_s19 = sshll.u32 %s747_s18, 4  ;;  %p694_p2 = scmp.ne.s32.totalorder %s858_s3, %s693_s23  ;;  %s45_s19 = int_to_ptr.vmem [resolvable:$true] %s44_s19 }
  0x25   :  { %p697_p3 = scmp.lt.u32.totalorder %s693_s23, %s858_s3 }
  0x27   :  { %p699_p4 = pnand %p697_p3, %p694_p2 }
  0x29   :  { %702 = shalt.err (!%p699_p4)
}
  0x2a   :  { %s703_s28 = scalar_lea.vmem %s45_s19, 4096  ;;  %p708_p6 = scmp.lt.s32.totalorder %s45_s19, %s45_s19 }
  0x2b   :  { %p704_p5 = scmp.ne.s32.totalorder %s45_s19, %s703_s28  ;;  %p709_p7 = scmp.lt.s32.totalorder %s703_s28, %s703_s28 }
  0x2d   :  { %p710_p8 = por %p709_p7, %p708_p6 }
  0x2f   :  { %p711_p9 = pnand %p710_p8, %p704_p5 }
  0x31   :  { %714 = shalt.err (!%p711_p9)
}
  0x32   :  { %50 = dma.hbm_to_vmem [thread:$0]  %s858_s3, 4096, %s45_s19, [#allocation6], %s745_s30, %s745_s30, %s746_s6  }
  0x33   :  { %737 = dma.done.wait [#allocation3], 256  }
  0x34   :  { %738 = vsyncadd [#allocation3], 4294967040 }
  0x35   :  { %739 = dma.done.wait [#allocation6], 6144  }
  0x36   :  { %740 = vsyncadd [#allocation6], 4294961152  ;;  %v64_v0 = vld [vmem:[#allocation5] sm:$0xff]  ;;  %v65_v1 = vld [vmem:[#allocation5 + $0x8] sm:$0xff]  ;;  %s748_s10 = smov [#allocation8]  }
  0x37   :  { %v66_v2 = vld [vmem:[#allocation5 + $0x10] sm:$0xff]  ;;  %v547_v3 = vpack.c.bf16 %v65_v1, %v64_v0  ;;  %v67_v4 = vld [vmem:[#allocation5 + $0x18] sm:$0xff]  ;;  %v68_v6 = vld [vmem:[#allocation5 + $0x20] sm:$0xff]  ;;  %s371_s11 = sshll.u32 %s748_s10, 4  ;;  %s372_s11 = int_to_ptr.vmem [resolvable:$true] %s371_s11 }
  0x38   :  { %v551_v5 = vpack.c.bf16 %v67_v4, %v66_v2  ;;  %v69_v7 = vld [vmem:[#allocation5 + $0x28] sm:$0xff]  ;;  %v70_v9 = vld [vmem:[#allocation5 + $0x30] sm:$0xff]  ;;  %v71_v10 = vld [vmem:[#allocation5 + $0x38] sm:$0xff]  ;;  %s715_s12 = scalar_lea.vmem %s372_s11, 256  ;;  %p720_p11 = scmp.lt.s32.totalorder %s372_s11, %s372_s11 }
  0x39   :  { %548 = vmatprep.subr.bf16.mxu0 %v547_v3  ;;  %v555_v8 = vpack.c.bf16 %v69_v7, %v68_v6  ;;  %v62_v11 = vld [vmem:[#allocation2] sm:$0xff]  ;;  %v164_v12 = vld [vmem:[#allocation7] sm:$0xff]  ;;  %v165_v13 = vld [vmem:[#allocation7 + $0x8] sm:$0xff]  ;;  %v559_v20 = vpack.c.bf16 %v71_v10, %v70_v9  ;;  %p716_p10 = scmp.ne.s32.totalorder %s372_s11, %s715_s12  ;;  %p721_p12 = scmp.lt.s32.totalorder %s715_s12, %s715_s12 }
  0x3a   :  { %550 = vmatpush3.bf16.msra.mxu0 %v547_v3  ;;  %474 = vmatprep.mubr.f32.mxu0 %v62_v11  ;;  %v166_v14 = vld [vmem:[#allocation7 + $0x10] sm:$0xff]  ;;  %v579_v15 = vpack.c.bf16 %v165_v13, %v164_v12  ;;  %v167_v16 = vld [vmem:[#allocation7 + $0x18] sm:$0xff]  ;;  %v168_v18 = vld [vmem:[#allocation7 + $0x20] sm:$0xff] }
  0x3b   :  { %552 = vmatprep.subr.bf16.mxu0 %v551_v5  ;;  %v583_v17 = vpack.c.bf16 %v167_v16, %v166_v14  ;;  %v169_v19 = vld [vmem:[#allocation7 + $0x28] sm:$0xff]  ;;  %v72_v21 = vld [vmem:[#allocation5 + $0x40] sm:$0xff]  ;;  %v170_v24 = vld [vmem:[#allocation7 + $0x30] sm:$0xff]  ;;  %p722_p13 = por %p721_p12, %p720_p11 }
  0x3c   :  { %580 = vmatprep.subr.bf16.mxu1 %v579_v15  ;;  %v73_v22 = vld [vmem:[#allocation5 + $0x48] sm:$0xff]  ;;  %v587_v23 = vpack.c.bf16 %v169_v19, %v168_v18  ;;  %v171_v25 = vld [vmem:[#allocation7 + $0x38] sm:$0xff]  ;;  %v74_v27 = vld [vmem:[#allocation5 + $0x50] sm:$0xff] }
  0x3d   :  { %582 = vmatpush3.bf16.msra.mxu1 %v579_v15  ;;  %v563_v26 = vpack.c.bf16 %v73_v22, %v72_v21  ;;  %v75_v28 = vld [vmem:[#allocation5 + $0x58] sm:$0xff]  ;;  %v591_v29 = vpack.c.bf16 %v171_v25, %v170_v24  ;;  %v172_v30 = vld [vmem:[#allocation7 + $0x40] sm:$0xff]  ;;  %v173_v31 = vld [vmem:[#allocation7 + $0x48] sm:$0xff]  ;;  %p723_p0 = pnand %p722_p13, %p716_p10 }
  0x3e   :  { %554 = vmatpush3.bf16.msra.mxu0 %v551_v5  ;;  %584 = vmatprep.subr.bf16.mxu1 %v583_v17  ;;  %v567_v32 = vpack.c.bf16 %v75_v28, %v74_v27  ;;  %v76_v33 = vld [vmem:[#allocation5 + $0x60] sm:$0xff]  ;;  %v77_v34 = vld [vmem:[#allocation5 + $0x68] sm:$0xff]  ;;  %v595_v35 = vpack.c.bf16 %v173_v31, %v172_v30  ;;  %v174_v36 = vld [vmem:[#allocation7 + $0x50] sm:$0xff] }
  0x3f   :  { %556 = vmatprep.subr.bf16.mxu0 %v555_v8  ;;  %v175_v37 = vld [vmem:[#allocation7 + $0x58] sm:$0xff]  ;;  %v571_v38 = vpack.c.bf16 %v77_v34, %v76_v33  ;;  %v78_v39 = vld [vmem:[#allocation5 + $0x70] sm:$0xff]  ;;  %v176_v42 = vld [vmem:[#allocation7 + $0x60] sm:$0xff] }
  0x40   :  { %v79_v40 = vld [vmem:[#allocation5 + $0x78] sm:$0xff]  ;;  %v599_v41 = vpack.c.bf16 %v175_v37, %v174_v36  ;;  %v177_v43 = vld [vmem:[#allocation7 + $0x68] sm:$0xff]  ;;  %v178_v47 = vld [vmem:[#allocation7 + $0x70] sm:$0xff] }
  0x41   :  { %586 = vmatpush3.bf16.msra.mxu1 %v583_v17  ;;  %v575_v44 = vpack.c.bf16 %v79_v40, %v78_v39  ;;  %v603_v45 = vpack.c.bf16 %v177_v43, %v176_v42  ;;  %v63_v46 = vld [vmem:[#allocation2 + $0x8] sm:$0xff]  ;;  %v265_v50 = vld [vmem:[#allocation7 + $0x80] sm:$0xff]  ;;  %v266_v51 = vld [vmem:[#allocation7 + $0x88] sm:$0xff] }
  0x42   :  { %558 = vmatpush3.bf16.msra.mxu0 %v555_v8  ;;  %588 = vmatprep.subr.bf16.mxu1 %v587_v23  ;;  %v179_v48 = vld [vmem:[#allocation7 + $0x78] sm:$0xff]  ;;  %v267_v52 = vld [vmem:[#allocation7 + $0x90] sm:$0xff]  ;;  %v611_v53 = vpack.c.bf16 %v266_v51, %v265_v50  ;;  %v269_v56 = vld [vmem:[#allocation7 + $0xa0] sm:$0xff] }
  0x43   :  { %560 = vmatprep.subr.bf16.mxu0 %v559_v20  ;;  %v607_v49 = vpack.c.bf16 %v179_v48, %v178_v47  ;;  %v268_v54 = vld [vmem:[#allocation7 + $0x98] sm:$0xff]  ;;  %v270_v57 = vld [vmem:[#allocation7 + $0xa8] sm:$0xff]  ;;  %v271_v59 = vld [vmem:[#allocation7 + $0xb0] sm:$0xff] }
  0x44   :  { %v615_v55 = vpack.c.bf16 %v268_v54, %v267_v52  ;;  %v619_v58 = vpack.c.bf16 %v270_v57, %v269_v56  ;;  %v272_v60 = vld [vmem:[#allocation7 + $0xb8] sm:$0xff]  ;;  %v273_v62 = vld [vmem:[#allocation7 + $0xc0] sm:$0xff]  ;;  %v274_v63 = vld [vmem:[#allocation7 + $0xc8] sm:$0xff] }
  0x45   :  { %590 = vmatpush3.bf16.msra.mxu1 %v587_v23  ;;  %v623_v61 = vpack.c.bf16 %v272_v60, %v271_v59  ;;  %v627_v0 = vpack.c.bf16 %v274_v63, %v273_v62  ;;  %v275_v1 = vld [vmem:[#allocation7 + $0xd0] sm:$0xff]  ;;  %v276_v2 = vld [vmem:[#allocation7 + $0xd8] sm:$0xff]  ;;  %v277_v4 = vld [vmem:[#allocation7 + $0xe0] sm:$0xff] }
  0x46   :  { %562 = vmatpush3.bf16.msra.mxu0 %v559_v20  ;;  %592 = vmatprep.subr.bf16.mxu1 %v591_v29  ;;  %v631_v3 = vpack.c.bf16 %v276_v2, %v275_v1  ;;  %v278_v5 = vld [vmem:[#allocation7 + $0xe8] sm:$0xff]  ;;  %v384_v7 = vld [vmem:[%s857_s2] ss:$0 sm:$0xff]  ;;  %v280_v15 = vld [vmem:[#allocation7 + $0xf8] sm:$0xff] }
  0x47   :  { %564 = vmatprep.subr.bf16.mxu0 %v563_v26  ;;  %v635_v6 = vpack.c.bf16 %v278_v5, %v277_v4  ;;  %v279_v14 = vld [vmem:[#allocation7 + $0xf0] sm:$0xff] }
  0x48   :  { %v639_v16 = vpack.c.bf16 %v280_v15, %v279_v14  ;;  %v385_v17 = vld [vmem:[%s859_s4] ss:$0 sm:$0xff]  ;;  %v387_v24 = vld [vmem:[%s859_s4 + $0x1] ss:$0 sm:$0xff] }
  0x49   :  { %594 = vmatpush3.bf16.msra.mxu1 %v591_v29 }
  0x4a   :  { %566 = vmatpush3.bf16.msra.mxu0 %v563_v26  ;;  %596 = vmatprep.subr.bf16.mxu1 %v595_v35 }
  0x4b   :  { %568 = vmatprep.subr.bf16.mxu0 %v567_v32 }
  0x4d   :  { %598 = vmatpush3.bf16.msra.mxu1 %v595_v35 }
  0x4e   :  { %570 = vmatpush3.bf16.msra.mxu0 %v567_v32  ;;  %600 = vmatprep.subr.bf16.mxu1 %v599_v41 }
  0x4f   :  { %572 = vmatprep.subr.bf16.mxu0 %v571_v38 }
  0x51   :  { %602 = vmatpush3.bf16.msra.mxu1 %v599_v41 }
  0x52   :  { %574 = vmatpush3.bf16.msra.mxu0 %v571_v38  ;;  %604 = vmatprep.subr.bf16.mxu1 %v603_v45 }
  0x53   :  { %576 = vmatprep.subr.bf16.mxu0 %v575_v44 }
  0x55   :  { %606 = vmatpush3.bf16.msra.mxu1 %v603_v45 }
  0x56   :  { %578 = vmatpush3.bf16.msra.mxu0 %v575_v44  ;;  %608 = vmatprep.subr.bf16.mxu1 %v607_v49 }
  0x57   :  { %612 = vmatprep.subr.bf16.mxu0 %v611_v53 }
  0x59   :  { %475 = vmatmul.mubr.f32.vlgmr.msra.gmra.mrb[0].mxu0 %v63_v46  ;;  %610 = vmatpush3.bf16.msra.mxu1 %v607_v49 }
  0x5a   :  { %614 = vmatpush3.bf16.msra.mxu0 %v611_v53 }
  0x5b   :  { %616 = vmatprep.subr.bf16.mxu0 %v615_v55 }
  0x5e   :  { %618 = vmatpush3.bf16.msra.mxu0 %v615_v55 }
  0x5f   :  { %620 = vmatprep.subr.bf16.mxu0 %v619_v58 }
  0x62   :  { %622 = vmatpush3.bf16.msra.mxu0 %v619_v58 }
  0x63   :  { %624 = vmatprep.subr.bf16.mxu0 %v623_v61 }
  0x66   :  { %626 = vmatpush3.bf16.msra.mxu0 %v623_v61 }
  0x67   :  { %628 = vmatprep.subr.bf16.mxu0 %v627_v0 }
  0x6a   :  { %630 = vmatpush3.bf16.msra.mxu0 %v627_v0 }
  0x6b   :  { %632 = vmatprep.subr.bf16.mxu0 %v631_v3 }
  0x6e   :  { %634 = vmatpush3.bf16.msra.mxu0 %v631_v3 }
  0x6f   :  { %636 = vmatprep.subr.bf16.mxu0 %v635_v6 }
  0x72   :  { %638 = vmatpush3.bf16.msra.mxu0 %v635_v6 }
  0x73   :  { %640 = vmatprep.subr.bf16.mxu0 %v639_v16 }
  0x76   :  { %642 = vmatpush3.bf16.msra.mxu0 %v639_v16 }
 0x12c   :  { %v476_v8 = vpop.f32.mrb[0].mxu0 }
 0x12d   :  { %v159_v9 = vadd.f32 %v476_v8, %v384_v7  ;;  %v153_v10 = vpop.f32.mrb[1].mxu0 }
 0x12e   :  { %v154_v11 = vadd.f32 %v384_v7, %v153_v10 }
 0x12f   :  { %v163_v13 = vmax.f32 %v159_v9, 0.0 }
 0x130   :  { %v162_v12 = vmax.f32 %v154_v11, 0.0 }
 0x132   :  { %509 = vmatprep.mubr.f32.mxu1 %v162_v12 }
 0x133   :  { %510 = vmatmul.mubr.f32.vlgmr.msra.gmra.mrb[0].mxu1 %v163_v13 }
 0x206   :  { %v511_v18 = vpop.f32.mrb[0].mxu1 }
 0x207   :  { %v259_v19 = vadd.f32 %v511_v18, %v385_v17  ;;  %v253_v20 = vpop.f32.mrb[1].mxu1 }
 0x208   :  { %v254_v21 = vadd.f32 %v385_v17, %v253_v20 }
 0x209   :  { %v263_v23 = vmax.f32 %v259_v19, 0.0 }
 0x20a   :  { %v262_v22 = vmax.f32 %v254_v21, 0.0 }
 0x20c   :  { %544 = vmatprep.mubr.f32.mxu0 %v262_v22 }
 0x20d   :  { %545 = vmatmul.mubr.f32.vlgmr.msra.gmra.mrb[2].mxu0 %v263_v23 }
 0x2e0   :  { %v546_v25 = vpop.f32.mrb[2].mxu0 }
 0x2e1   :  { %v361_v26 = vadd.f32 %v546_v25, %v387_v24  ;;  %v355_v27 = vpop.f32.mrb[3].mxu0 }
 0x2e2   :  { %v356_v28 = vadd.f32 %v387_v24, %v355_v27 }
 0x2e3   :  { %365 = vst [vmem:[#allocation8 + $0x8] sm:$0xff] %v361_v26 }
 0x2e4   :  { %364 = vst [vmem:[#allocation8] sm:$0xff] %v356_v28 }
 0x2e5   :  { %726 = shalt.err (!%p723_p0)
}
 0x2e6   :  { %s727_s4 = scalar_lea.hbm %s860_s5, 256 }
 0x2e7   :  { %p728_p1 = scmp.ne.s32.totalorder %s860_s5, %s727_s4  ;;  %p731_p2 = scmp.lt.u32.totalorder %s727_s4, %s860_s5 }
 0x2e9   :  { %p733_p3 = pnand %p731_p2, %p728_p1 }
 0x2eb   :  { %736 = shalt.err (!%p733_p3)
}
 0x2ec   :  { %377 = dma.vmem_to_hbm [thread:$0]  %s372_s11, 256, %s860_s5, [#allocation4], %s745_s30, %s745_s30, %s746_s6  }
 0x2ed   :  { %741 = dma.done.wait [#allocation4], 256  }
 0x2ee   :  { %742 = vsyncadd [#allocation4], 4294967040 }
 0x2ef   :  { %381 = vsyncpa [#allocation3], 1 }
 0x2f0   :  { %382 = vsyncpa [#allocation6], 1 }
 0x2f1   :  { %383 = vsyncpa [#allocation4], 1 }

</bundles_post_ra>
